<compile_context>
chip_gen: v7x
topology: tpu7x:2x2x1
jax: 0.10.0
libtpu: 0.0.40
codegen_flags: <defaults>
</compile_context>

<pallas_src>
import functools

import jax
import jax.numpy as jnp
from jax.experimental import pallas as pl
from jax.experimental.pallas import tpu as pltpu


def _mlp_kernel(x_ref, wfc_ref, bfc_ref, wproj_ref, bproj_ref, o_ref, acc_ref):
    # x_ref:    (bm, C)      wfc_ref:   (C, bh)    bfc_ref:   (1, bh)
    # wproj_ref:(bh, C)      bproj_ref: (1, C)
    # o_ref:    (bm, C)      acc_ref:   (bm, C) f32 scratch
    k = pl.program_id(1)

    @pl.when(k == 0)
    def _init():
        acc_ref[...] = jnp.zeros_like(acc_ref)

    # c_fc on this hidden slab: native-dtype MXU matmul, f32 accumulation.
    h = jnp.dot(x_ref[...], wfc_ref[...], preferred_element_type=jnp.float32)
    h = h + bfc_ref[...].astype(jnp.float32)

    # Exact (erf) GELU in f32 (matches torch.nn.GELU() default).
    h = 0.5 * h * (1.0 + jax.lax.erf(h * 0.7071067811865475))

    # c_proj partial contraction over this hidden slab -> f32 accumulator.
    acc_ref[...] += jnp.dot(h.astype(wproj_ref.dtype), wproj_ref[...],
                            preferred_element_type=jnp.float32)

    @pl.when(k == pl.num_programs(1) - 1)
    def _flush():
        out = acc_ref[...] + bproj_ref[...].astype(jnp.float32)
        o_ref[...] = out.astype(o_ref.dtype)   # dropout: identity (eval mode)


def _largest_tile(dim, target, granule):
    """Largest multiple-of-`granule` divisor of `dim` that is <= target,
    else the full dim (full extent always satisfies the (8,128) rule)."""
    cap = min(target, dim)
    t = cap - (cap % granule)
    while t > 0:
        if dim % t == 0:
            return t
        t -= granule
    return dim


@functools.partial(jax.jit, static_argnames=("block_m", "block_h"))
def mlp_forward(x, w_fc, b_fc, w_proj, b_proj, *, block_m=None, block_h=None):
    """x: (B, T, C). w_fc: (C, 4C), b_fc: (4C,), w_proj: (4C, C), b_proj: (C,).

    Weights are stored pre-transposed relative to PyTorch nn.Linear
    (out_features, in_features), i.e. w_fc = c_fc.weight.T etc.
    """
    B, T, C = x.shape
    H = w_fc.shape[1]
    M = B * T
    x2d = x.reshape(M, C)

    itb = jnp.dtype(x.dtype).itemsize
    wtb = jnp.dtype(w_fc.dtype).itemsize
    sub = (8 * 4) // itb                      # sublane granule: 8 f32 / 16 bf16

    if block_m is None:
        block_m = _largest_tile(M, 512, sub)
        # Give the "parallel" row axis >= 2 steps when possible (v7x megacore).
        if M // block_m < 2 and block_m % (2 * sub) == 0:
            block_m //= 2
    if block_h is None:
        block_h = _largest_tile(H, 512, 128)  # lane granule 128

    assert M % block_m == 0 and H % block_h == 0

    b_fc2 = b_fc.reshape(1, H)
    b_proj2 = b_proj.reshape(1, C)

    # VMEM budget: double-buffered x/out/weight tiles + acc + hidden slab.
    est = (2 * block_m * C * itb + 2 * block_m * C * itb
           + 2 * C * block_h * wtb + 2 * block_h * C * wtb
           + 2 * block_h * wtb + 2 * C * wtb
           + block_m * C * 4 + block_m * block_h * 4)
    vmem_limit = int(min(max(2 * est, 32 * 2**20), 48 * 2**20))

    cost = pl.CostEstimate(
        flops=4 * M * C * H,                  # two matmuls, 2*M*C*H each
        transcendentals=M * H,                # erf per hidden element
        bytes_accessed=(2 * M * C * itb + C * H * wtb + H * C * wtb
                        + H * wtb + C * wtb),
    )

    out2d = pl.pallas_call(
        _mlp_kernel,
        out_shape=jax.ShapeDtypeStruct((M, C), x.dtype),
        grid_spec=pltpu.PrefetchScalarGridSpec(
            num_scalar_prefetch=0,
            grid=(M // block_m, H // block_h),
            in_specs=[
                pl.BlockSpec((block_m, C), lambda i, k: (i, 0)),   # x rows
                pl.BlockSpec((C, block_h), lambda i, k: (0, k)),   # W_fc slab
                pl.BlockSpec((1, block_h), lambda i, k: (0, k)),   # b_fc slab
                pl.BlockSpec((block_h, C), lambda i, k: (k, 0)),   # W_proj slab
                pl.BlockSpec((1, C), lambda i, k: (0, 0)),         # b_proj
            ],
            out_specs=pl.BlockSpec((block_m, C), lambda i, k: (i, 0)),
            scratch_shapes=[pltpu.VMEM((block_m, C), jnp.float32)],
        ),
        compiler_params=pltpu.CompilerParams(
            dimension_semantics=("parallel", "arbitrary"),
            vmem_limit_bytes=vmem_limit),
        cost_estimate=cost,
    )(x2d, w_fc, b_fc2, w_proj, b_proj2)

    return out2d.reshape(B, T, C)


def reference_mlp(x, w_fc, b_fc, w_proj, b_proj):
    h = jnp.einsum("btc,ch->bth", x, w_fc) + b_fc
    h = 0.5 * h * (1.0 + jax.lax.erf(h / jnp.sqrt(2.0)))
    o = jnp.einsum("bth,hc->btc", h, w_proj) + b_proj
    return o  # dropout identity (eval)


if __name__ == "__main__":
    # config: n_embd=32, hidden=128, bias=True, dropout=0.0 (eval)
    B, T, C = 2, 8, 32
    H = 4 * C

    key = jax.random.PRNGKey(0)
    kx, k1, k2, k3, k4 = jax.random.split(key, 5)

    x = jax.random.normal(kx, (B, T, C), dtype=jnp.float32)
    w_fc = jax.random.normal(k1, (C, H), dtype=jnp.float32) * 0.02
    b_fc = jax.random.normal(k2, (H,), dtype=jnp.float32) * 0.02
    w_proj = jax.random.normal(k3, (H, C), dtype=jnp.float32) * 0.02
    b_proj = jax.random.normal(k4, (C,), dtype=jnp.float32) * 0.02

    out = mlp_forward(x, w_fc, b_fc, w_proj, b_proj)
    out = jax.block_until_ready(out)

    ref = reference_mlp(x, w_fc, b_fc, w_proj, b_proj)
    assert out.shape == (B, T, C)
    assert jnp.allclose(out, ref, atol=1e-5, rtol=1e-5), "mismatch vs reference"

    print("KERNEL_OK")
</pallas_src>

<mosaic_0001>
module attributes {stable_mosaic.version = 11 : i64} {
  func.func @_mlp_kernel(%arg0: i32, %arg1: i32, %arg2: memref<8x32xf32, #tpu.memory_space<vmem>>, %arg3: memref<32x128xf32, #tpu.memory_space<vmem>>, %arg4: memref<1x128xf32, #tpu.memory_space<vmem>>, %arg5: memref<128x32xf32, #tpu.memory_space<vmem>>, %arg6: memref<1x32xf32, #tpu.memory_space<vmem>>, %arg7: memref<8x32xf32, #tpu.memory_space<vmem>>, %arg8: memref<8x32xf32, #tpu.memory_space<vmem>>) attributes {dimension_semantics = [#tpu.dimension_semantics<parallel>, #tpu.dimension_semantics<arbitrary>], iteration_bounds = array<i64: 2, 1>, scalar_prefetch = 0 : i64, scratch_operands = 1 : i64, tpu.core_type = #tpu.core_type<tc>, window_params = [{transform_indices = @transform_0, window_bounds = array<i64: 8, 32>}, {transform_indices = @transform_1, window_bounds = array<i64: 32, 128>}, {transform_indices = @transform_2, window_bounds = array<i64: 1, 128>}, {transform_indices = @transform_3, window_bounds = array<i64: 128, 32>}, {pipeline_mode = #tpu.pipeline_mode<synchronous>, transform_indices = @transform_4, window_bounds = array<i64: 1, 32>}, {transform_indices = @transform_5, window_bounds = array<i64: 8, 32>}]} {
    %c0_i32 = arith.constant 0 : i32
    %0 = arith.cmpi eq, %arg1, %c0_i32 : i32
    %1 = arith.extui %0 : i1 to i32
    %c0_i32_0 = arith.constant 0 : i32
    %2 = arith.cmpi ne, %1, %c0_i32_0 : i32
    scf.if %2 {
      %cst_18 = arith.constant 0.000000e+00 : f32
      %25 = vector.broadcast %cst_18 : f32 to vector<8x32xf32>
      %c0_19 = arith.constant 0 : index
      %c0_20 = arith.constant 0 : index
      %26 = vector.load %arg8[%c0_19, %c0_20] : memref<8x32xf32, #tpu.memory_space<vmem>>, vector<8x32xf32>
      tpu.vector_store %arg8[%c0_19, %c0_20], %25 {strides = array<i32>} : memref<8x32xf32, #tpu.memory_space<vmem>>, vector<8x32xf32>,
    } else {
    }
    %c0 = arith.constant 0 : index
    %c0_1 = arith.constant 0 : index
    %3 = vector.load %arg2[%c0, %c0_1] : memref<8x32xf32, #tpu.memory_space<vmem>>, vector<8x32xf32>
    %c0_2 = arith.constant 0 : index
    %c0_3 = arith.constant 0 : index
    %4 = vector.load %arg3[%c0_2, %c0_3] : memref<32x128xf32, #tpu.memory_space<vmem>>, vector<32x128xf32>
    %cst = arith.constant dense<0.000000e+00> : vector<8x128xf32>
    %5 = tpu.matmul %3, %4, %cst {dimension_numbers = #tpu.dot_dimension_numbers<[1], [0], [0], [1], [0, 0, 1, 1], [], []>} : vector<8x32xf32>, vector<32x128xf32>, vector<8x128xf32> -> vector<8x128xf32>
    %c0_4 = arith.constant 0 : index
    %c0_5 = arith.constant 0 : index
    %6 = vector.load %arg4[%c0_4, %c0_5] : memref<1x128xf32, #tpu.memory_space<vmem>>, vector<1x128xf32>
    %7 = vector.broadcast %6 : vector<1x128xf32> to vector<8x128xf32>
    %8 = arith.addf %5, %7 : vector<8x128xf32>
    %cst_6 = arith.constant 5.000000e-01 : f32
    %9 = vector.broadcast %cst_6 : f32 to vector<8x128xf32>
    %10 = arith.mulf %9, %8 : vector<8x128xf32>
    %cst_7 = arith.constant 0.707106769 : f32
    %11 = vector.broadcast %cst_7 : f32 to vector<8x128xf32>
    %12 = arith.mulf %8, %11 : vector<8x128xf32>
    %13 = math.erf %12 : vector<8x128xf32>
    %cst_8 = arith.constant 1.000000e+00 : f32
    %14 = vector.broadcast %cst_8 : f32 to vector<8x128xf32>
    %15 = arith.addf %14, %13 : vector<8x128xf32>
    %16 = arith.mulf %10, %15 : vector<8x128xf32>
    %c0_9 = arith.constant 0 : index
    %c0_10 = arith.constant 0 : index
    %17 = vector.load %arg8[%c0_9, %c0_10] : memref<8x32xf32, #tpu.memory_space<vmem>>, vector<8x32xf32>
    %c0_11 = arith.constant 0 : index
    %c0_12 = arith.constant 0 : index
    %18 = vector.load %arg5[%c0_11, %c0_12] : memref<128x32xf32, #tpu.memory_space<vmem>>, vector<128x32xf32>
    %cst_13 = arith.constant dense<0.000000e+00> : vector<8x32xf32>
    %19 = tpu.matmul %16, %18, %cst_13 {dimension_numbers = #tpu.dot_dimension_numbers<[1], [0], [0], [1], [0, 0, 1, 1], [], []>} : vector<8x128xf32>, vector<128x32xf32>, vector<8x32xf32> -> vector<8x32xf32>
    %20 = arith.addf %17, %19 : vector<8x32xf32>
    %c0_14 = arith.constant 0 : index
    %c0_15 = arith.constant 0 : index
    %21 = vector.load %arg8[%c0_14, %c0_15] : memref<8x32xf32, #tpu.memory_space<vmem>>, vector<8x32xf32>
    tpu.vector_store %arg8[%c0_14, %c0_15], %20 {strides = array<i32>} : memref<8x32xf32, #tpu.memory_space<vmem>>, vector<8x32xf32>,
    %c0_i32_16 = arith.constant 0 : i32
    %22 = arith.cmpi eq, %arg1, %c0_i32_16 : i32
    %23 = arith.extui %22 : i1 to i32
    %c0_i32_17 = arith.constant 0 : i32
    %24 = arith.cmpi ne, %23, %c0_i32_17 : i32
    scf.if %24 {
      %c0_18 = arith.constant 0 : index
      %c0_19 = arith.constant 0 : index
      %25 = vector.load %arg8[%c0_18, %c0_19] : memref<8x32xf32, #tpu.memory_space<vmem>>, vector<8x32xf32>
      %c0_20 = arith.constant 0 : index
      %c0_21 = arith.constant 0 : index
      %26 = vector.load %arg6[%c0_20, %c0_21] : memref<1x32xf32, #tpu.memory_space<vmem>>, vector<1x32xf32>
      %27 = vector.broadcast %26 : vector<1x32xf32> to vector<8x32xf32>
      %28 = arith.addf %25, %27 : vector<8x32xf32>
      %c0_22 = arith.constant 0 : index
      %c0_23 = arith.constant 0 : index
      %29 = vector.load %arg7[%c0_22, %c0_23] : memref<8x32xf32, #tpu.memory_space<vmem>>, vector<8x32xf32>
      tpu.vector_store %arg7[%c0_22, %c0_23], %28 {strides = array<i32>} : memref<8x32xf32, #tpu.memory_space<vmem>>, vector<8x32xf32>,
    } else {
    }
    return
  }
  func.func @transform_0(%arg0: i32, %arg1: i32) -> (i32, i32) {
    %c0_i32 = arith.constant 0 : i32
    %c0_i32_0 = arith.constant 0 : i32
    return %arg0, %c0_i32 : i32, i32
  }
  func.func @transform_1(%arg0: i32, %arg1: i32) -> (i32, i32) {
    %c0_i32 = arith.constant 0 : i32
    %c0_i32_0 = arith.constant 0 : i32
    return %c0_i32, %arg1 : i32, i32
  }
  func.func @transform_2(%arg0: i32, %arg1: i32) -> (i32, i32) {
    %c0_i32 = arith.constant 0 : i32
    %c0_i32_0 = arith.constant 0 : i32
    return %c0_i32, %arg1 : i32, i32
  }
  func.func @transform_3(%arg0: i32, %arg1: i32) -> (i32, i32) {
    %c0_i32 = arith.constant 0 : i32
    %c0_i32_0 = arith.constant 0 : i32
    return %arg1, %c0_i32 : i32, i32
  }
  func.func @transform_4(%arg0: i32, %arg1: i32) -> (i32, i32) {
    %c0_i32 = arith.constant 0 : i32
    %c0_i32_0 = arith.constant 0 : i32
    %c0_i32_1 = arith.constant 0 : i32
    return %c0_i32, %c0_i32_0 : i32, i32
  }
  func.func @transform_5(%arg0: i32, %arg1: i32) -> (i32, i32) {
    %c0_i32 = arith.constant 0 : i32
    %c0_i32_0 = arith.constant 0 : i32
    return %arg0, %c0_i32 : i32, i32
  }
}

</mosaic_0001>

<bundles_post_ra>
// kernel: mlp_forward.1
= control target key start
LH: loop header
LB: loop body
LE: loop exit
PB: predicated region body
PF: predicated region fallthrough
CT: control target
= control target key end

     0   :  { %10 = vsyncpa [#allocation4], 0  ;;  %s1078_s0 = inlined_call_operand.vmem [shape: f32[16,32], index: 0, kind: input, shape index: {}]   ;;  %s1079_s1 = inlined_call_operand.vmem [shape: f32[32,128], index: 1, kind: input, shape index: {}]   ;;  %s1080_s2 = inlined_call_operand.vmem [shape: f32[1,128], index: 2, kind: input, shape index: {}]   ;;  %s1081_s3 = inlined_call_operand.vmem [shape: f32[128,32], index: 3, kind: input, shape index: {}]   ;;  %s1082_s4 = inlined_call_operand.vmem [shape: f32[1,32], index: 4, kind: input, shape index: {}]   ;;  %s1083_s5 = inlined_call_operand.hbm [shape: f32[16,32], index: 5, kind: output, shape index: {}]  }
   0x1   :  { %12 = vsyncpa [#allocation4 + $0x1], 0  ;;  %s896_s18 = smov 0   ;;  %s898_s19 = smov 0  }
   0x2   :  { %s900_s20 = smov 0   ;;  %s902_s21 = smov 0  }
   0x3   :  { %s904_s22 = smov 0   ;;  %s906_s23 = smov 0  }
   0x4 LB: > { %s607_s24 = sadd.s32 4294967295, %s860_s23   ;;  %s608_s25 = sadd.s32 4294967294, %s860_s23   ;;  %s860_s23 = sphi %s906_s23, %s18_s23   ;;  %s856_s22 = sphi %s904_s22, %s1090_s22   ;;  %s852_s21 = sphi %s902_s21, %s1089_s21   ;;  %s848_s20 = sphi %s900_s20, %s1088_s20   ;;  %s844_s19 = sphi %s898_s19, %s1087_s19   ;;  %s840_s18 = sphi %s896_s18, %s1086_s18  }
   0x5   : > { %s30_s26 = sadd.s32 1, %s856_s22  ;;  %s162_s27 = sadd.s32 1, %s848_s20 }
   0x6   : > { %p32_p0 = scmp.ge.s32.totalorder %s30_s26, 2  ;;  %p172_p1 = scmp.ne.s32.totalorder %s848_s20, %s844_s19 }
   0x7   : > { %p173_p2 = scmp.eq.s32.totalorder %s607_s24, 1  ;;  %p178_p3 = scmp.ne.s32.totalorder %s844_s19, %s840_s18 }
   0x8   : > { %s1092_s26 = smov (%p32_p0, %s30_s26), 0  ;;  %p179_p5 = scmp.eq.s32.totalorder %s608_s25, 1 }
   0x9   : > { %p936_p4 = por %p173_p2, %p172_p1  ;;  %s159_s29 = ssub.s32 %s856_s22, %s1092_s26 }
   0xa   : > { %p614_p6 = scmp.ge.s32.totalorder %s860_s23, 1  ;;  %p160_p7 = scmp.eq.s32.totalorder %s159_s29, 0 }
   0xb   : > { %p943_p8 = por %p179_p5, %p178_p3  ;;  %p229_p9 = scmp.lt.s32.totalorder %s860_s23, 3 }
   0xc   : > { %s949_s6 = scalar_select %p160_p7, %s848_s20, %s162_s27  }
   0xd   : > { %p230_p10 = pnand %p614_p6, %p229_p9 }
   0xe   : > { %v292_v0 = vld [vmem:[%s1079_s1] sm:$0xff] (!%p230_p10)  ;;  %v293_v1 = vld [vmem:[%s1079_s1 + $0x8] sm:$0xff] (!%p230_p10)  ;;  %v294_v2 = vld [vmem:[%s1079_s1 + $0x10] sm:$0xff] (!%p230_p10)  ;;  %v862_v3 = vmov (!%p230_p10), 0.0|0.0   ;;  %vm863_vm0 = vmmov (!%p230_p10), 0   ;;  %v864_v6 = vmov (!%p230_p10), 0.0  }
   0xf   : > { %233 = sbr.rel (%p230_p10) target bundleno = 496 (0x1f0), region = 40  ;;  %692 = vmatprep.subr.bf16.mxu0 (!%p230_p10), %v862_v3  ;;  %v693_v4 = vpack.c.bf16 (!%p230_p10), %v293_v1, %v292_v0  ;;  %v295_v5 = vld [vmem:[%s1079_s1 + $0x18] sm:$0xff] (!%p230_p10)  ;;  %654 = vmatprep.mubr.msk.f32.mxu0 (!%p230_p10), %vm863_vm0, %v864_v6  ;;  %p268_p11 = scmp.lt.s32.totalorder (!%p230_p10), %s852_s21, 1  ;;  %vm289_vm1 = vcmask (!%p230_p10), 261120   ;;  %v383_v7 = vld [vmem:[%s1081_s3] sm:$0xff] (!%p230_p10)  ;;  %v384_v8 = vld [vmem:[%s1081_s3 + $0x8] sm:$0xff] (!%p230_p10) }
  0x10   : > { %290 = vst.msk [vmem:[#allocation2] sm:$0xff] (!%p230_p10), %vm289_vm1, %v864_v6  ;;  %698 = vmatprep.subr.bf16.mxu1 (!%p230_p10), %v862_v3  ;;  %v699_v9 = vpack.c.bf16 (!%p230_p10), %v384_v8, %v383_v7  ;;  %v385_v10 = vld [vmem:[%s1081_s3 + $0x10] sm:$0xff] (!%p230_p10)  ;;  %v386_v11 = vld [vmem:[%s1081_s3 + $0x18] sm:$0xff] (!%p230_p10)  ;;  %689 = vmatprep.mubr.msk.f32.mxu1 (!%p230_p10), %vm863_vm0, %v864_v6  ;;  %v696_v12 = vpack.c.bf16 (!%p230_p10), %v295_v5, %v294_v2  ;;  %v387_v14 = vld [vmem:[%s1081_s3 + $0x20] sm:$0xff] (!%p230_p10)  ;;  %s621_s13 = sshll.u32 (!%p230_p10), %s852_s21, 7 }
  0x11   : > { %694 = vmatpush3.bf16.msra.mxu0 (!%p230_p10), %v693_v4  ;;  %v702_v13 = vpack.c.bf16 (!%p230_p10), %v386_v11, %v385_v10  ;;  %v388_v15 = vld [vmem:[%s1081_s3 + $0x28] sm:$0xff] (!%p230_p10)  ;;  %v389_v18 = vld [vmem:[%s1081_s3 + $0x30] sm:$0xff] (!%p230_p10)  ;;  %v390_v19 = vld [vmem:[%s1081_s3 + $0x38] sm:$0xff] (!%p230_p10)  ;;  %s1030_s24 = scalar_lea.hbm (!%p230_p10), %s1083_s5, %s621_s13 }
  0x12   : > { %695 = vmatprep.subr.bf16.mxu0 (!%p230_p10), %v862_v3  ;;  %700 = vmatpush3.bf16.msra.mxu1 (!%p230_p10), %v699_v9  ;;  %v705_v17 = vpack.c.bf16 (!%p230_p10), %v388_v15, %v387_v14  ;;  %v708_v20 = vpack.c.bf16 (!%p230_p10), %v390_v19, %v389_v18  ;;  %v391_v21 = vld [vmem:[%s1081_s3 + $0x40] sm:$0xff] (!%p230_p10)  ;;  %v392_v22 = vld [vmem:[%s1081_s3 + $0x48] sm:$0xff] (!%p230_p10)  ;;  %v393_v24 = vld [vmem:[%s1081_s3 + $0x50] sm:$0xff] (!%p230_p10) }
  0x13   : > { %701 = vmatprep.subr.bf16.mxu1 (!%p230_p10), %v862_v3  ;;  %v711_v23 = vpack.c.bf16 (!%p230_p10), %v392_v22, %v391_v21  ;;  %v394_v25 = vld [vmem:[%s1081_s3 + $0x58] sm:$0xff] (!%p230_p10)  ;;  %v395_v27 = vld [vmem:[%s1081_s3 + $0x60] sm:$0xff] (!%p230_p10)  ;;  %v396_v28 = vld [vmem:[%s1081_s3 + $0x68] sm:$0xff] (!%p230_p10) }
  0x14   : > { %v714_v26 = vpack.c.bf16 (!%p230_p10), %v394_v25, %v393_v24  ;;  %v717_v29 = vpack.c.bf16 (!%p230_p10), %v396_v28, %v395_v27  ;;  %v397_v30 = vld [vmem:[%s1081_s3 + $0x70] sm:$0xff] (!%p230_p10)  ;;  %v398_v31 = vld [vmem:[%s1081_s3 + $0x78] sm:$0xff] (!%p230_p10)  ;;  %v617_v33 = vld [vmem:[%s1080_s2] ss:$0 sm:$0xff] (!%p230_p10) }
  0x15   : > { %697 = vmatpush3.bf16.msra.mxu0 (!%p230_p10), %v696_v12  ;;  %v720_v32 = vpack.c.bf16 (!%p230_p10), %v398_v31, %v397_v30  ;;  %v619_v46 = vld [vmem:[%s1082_s4] ss:$0 sm:$0xff] (!%p230_p10) }
  0x16   : > { %s269_s8 = scalar_select %p268_p11, %s852_s21, 1  ;;  %703 = vmatpush3.bf16.msra.mxu1 %v702_v13 }
  0x17   : > { %704 = vmatprep.subr.bf16.mxu1 %v862_v3  ;;  %v382_v42 = vld [vmem:[#allocation2] sm:$0xff]  ;;  %s865_s21 = smov [#allocation3]  }
  0x18   : > { %s616_s9 = sshll.u32 %s269_s8, 3  ;;  %s786_s29 = sshll.u32 %s865_s21, 4  ;;  %s787_s29 = int_to_ptr.vmem [resolvable:$false] %s786_s29 }
  0x19   : > { %s271_s16 = scalar_lea.vmem %s1078_s0, %s616_s9  ;;  %s265_s9 = sand.u32 1, %s844_s19  }
  0x1a   : > { %v291_v16 = vld [vmem:[%s271_s16] sm:$0xff]  ;;  %706 = vmatpush3.bf16.msra.mxu1 %v705_v17  ;;  %s615_s10 = sshll.u32 %s265_s9, 3  ;;  %s485_s25 = scalar_lea.sflag [#allocation4], %s265_s9 }
  0x1b   : > { %655 = vmatmul.mubr.msk.f32.vlgmr.msra.gmra.mrb[0].mxu0 %vm289_vm1, %v291_v16  ;;  %707 = vmatprep.subr.bf16.mxu1 %v862_v3  ;;  %s267_s14 = scalar_lea.vmem [#allocation3], %s615_s10  ;;  %s788_s7 = scalar_lea.vmem %s787_s29, 256 }
  0x1c   : > { %s498_s15 = sshll.u32 %s267_s14, 4  ;;  %s1032_s15 = int_to_ptr.vmem [resolvable:$true] %s498_s15 }
  0x1d   : > { %s782_s27 = scalar_lea.vmem %s1032_s15, 128  ;;  %p789_p1 = scmp.lt.s32.totalorder %s1032_s15, %s787_s29 }
  0x1e   : > { %709 = vmatpush3.bf16.msra.mxu1 %v708_v20  ;;  %p783_p12 = scmp.ne.s32.totalorder %s1032_s15, %s782_s27  ;;  %p790_p2 = scmp.lt.s32.totalorder %s788_s7, %s782_s27 }
  0x1f   : > { %710 = vmatprep.subr.bf16.mxu1 %v862_v3 }
  0x20   : > { %p784_p13 = pnand %p783_p12, %p936_p4  ;;  %p791_p3 = por %p790_p2, %p789_p1 }
  0x22   : > { %712 = vmatpush3.bf16.msra.mxu1 %v711_v23  ;;  %p785_p0 = pneg %p784_p13 }
  0x23   : > { %713 = vmatprep.subr.bf16.mxu1 %v862_v3 }
  0x24   : > { %p792_p5 = pnand %p791_p3, %p785_p0 }
  0x26   : > { %715 = vmatpush3.bf16.msra.mxu1 %v714_v26 }
  0x27   : > { %716 = vmatprep.subr.bf16.mxu1 %v862_v3 }
  0x2a   : > { %718 = vmatpush3.bf16.msra.mxu1 %v717_v29 }
  0x2b   : > { %719 = vmatprep.subr.bf16.mxu1 %v862_v3 }
  0x2e   : > { %721 = vmatpush3.bf16.msra.mxu1 %v720_v32 }
  0xee   : > { %v373_v34 = vpop.f32.mrb[0].mxu0 }
  0xef   : > { %v374_v35 = vadd.f32 %v617_v33, %v373_v34  ;;  %v656_v36 = vpop.f32.mrb[1].mxu0 }
  0xf1   : > { %v378_v37 = vmul.f32 0.70710677, %v374_v35  ;;  %v377_v39 = vmul.f32 0.5, %v374_v35 }
  0xf3   : > { %780 = verf.f32 %v378_v37 }
  0xfd   : > { %v781_v38 = vpop.eup %780 }
  0xfe   : > { %v380_v40 = vadd.f32 1.0, %v781_v38 }
 0x100   : > { %v381_v41 = vmul.f32 %v380_v40, %v377_v39 }
 0x102   : > { %690 = vmatmul.mubr.f32.vlgmr.msra.gmra.mrb[0].mxu1 %v381_v41 }
 0x1d5   : > { %v465_v43 = vpop.f32.mrb[0].mxu1 }
 0x1d6   : > { %v469_v44 = vadd.f32 %v465_v43, %v382_v42  ;;  %v691_v45 = vpop.f32.mrb[1].mxu1 }
 0x1d8   : > { %470 = vst.msk [vmem:[#allocation2] sm:$0xff] %vm289_vm1, %v469_v44 }
 0x1df   : > { %v474_v47 = vld [vmem:[#allocation2] sm:$0xff] }
 0x1e0   : > { %v482_v48 = vadd.f32 %v619_v46, %v474_v47 }
 0x1e2   : > { %483 = vst.msk [vmem:[%s267_s14] sm:$0xff] %vm289_vm1, %v482_v48 }
 0x1e3   : > { %795 = shalt.err (!%p792_p5)
}
 0x1e4   : > { %s796_s8 = scalar_lea.hbm %s1030_s24, 128  ;;  %s800_s11 = scalar_lea.hbm %s1083_s5, 256 }
 0x1e5   : > { %p797_p6 = scmp.ne.s32.totalorder %s1030_s24, %s796_s8  ;;  %p801_p10 = scmp.lt.u32.totalorder %s1030_s24, %s1083_s5 }
 0x1e6   : > { %p802_p11 = scmp.lt.u32.totalorder %s800_s11, %s796_s8  ;;  %p804_p13 = scmp.lt.u32.totalorder %s796_s8, %s1030_s24 }
 0x1e7   : > { %p798_p7 = pnand %p797_p6, %p936_p4 }
 0x1e8   : > { %p803_p12 = por %p802_p11, %p801_p10 }
 0x1e9   : > { %p799_p9 = pneg %p798_p7 }
 0x1ea   : > { %p805_p0 = por %p804_p13, %p803_p12 }
 0x1ec   : > { %p806_p1 = pnand %p805_p0, %p799_p9 }
 0x1ee   : > { %809 = shalt.err (!%p806_p1)
}
 0x1ef   : > { %722 = dma.vmem_to_hbm [thread:$0]  (%p936_p4), %s1032_s15, 128, %s1030_s24, %s485_s25  }
 0x1f0 PF: > { %p728_p2 = scmp.ge.s32.totalorder %s860_s23, 2  ;;  %s510_s14 = sand.u32 1, %s840_s18  }
 0x1f1   : > { %s511_s16 = scalar_lea.sflag [#allocation4], %s510_s14 }
 0x1f2   : > { %p725_p3 = pnand %p728_p2, %p943_p8 }
 0x1f4   : > { %835 = dma.done.wait (!%p725_p3), %s511_s16, 128  }
 0x1f5   : > { %837 = vsyncadd (!%p725_p3), %s511_s16, 4294967168  ;;  %s18_s23 = sadd.s32 1, %s860_s23   ;;  %s1086_s18 = smov %s844_s19 }
 0x1f6   : > { %p15_p5 = scmp.ge.s32.totalorder %s18_s23, 4   ;;  %s1087_s19 = smov %s848_s20 }
 0x1f7   : > { %s1088_s20 = smov %s949_s6  ;;  %s1089_s21 = smov %s856_s22 }
 0x1f8   : > { %s1090_s22 = smov %s1092_s26  ;;  %17 = sbr.rel (!%p15_p5) target bundleno = 4 (0x4), region = 92 }
 0x1ff   :  { %516 = vsyncpa [#allocation4], 1 }
 0x200   :  { %518 = vsyncpa [#allocation4 + $0x1], 1 }

</bundles_post_ra>
